<compile_context>
chip_gen: v7x
topology: tpu7x:2x2x1
jax: 0.10.0
libtpu: 0.0.40
codegen_flags: <defaults>
</compile_context>

<pallas_src>
import jax
import jax.numpy as jnp
from jax.experimental import pallas as pl
from jax.experimental.pallas import tpu as pltpu

LANE = 128
SUBLANE = 8


def _round_up(x, m):
    return (x + m - 1) // m * m


# ----------------------------- Pallas kernel -----------------------------

def gcn_fused_kernel(a_ref, x_ref, w1_ref, b1_ref, w2_ref, b2_ref, o_ref):
    a = a_ref[...]                                                   # bf16 [N, N]

    # ---- layer 1: h = relu(A_hat @ X @ W1 + b1) ----
    # F_in < hidden -> aggregate first so the big N-contraction is narrow.
    ax = jnp.dot(a, x_ref[...], preferred_element_type=jnp.float32)  # [N, F_in] f32
    h = jnp.dot(ax.astype(jnp.bfloat16), w1_ref[...],
                preferred_element_type=jnp.float32)                  # [N, H] f32
    h = jnp.maximum(h + b1_ref[...], 0.0)

    # F.dropout(..., training=False) is the identity at inference time.

    # ---- layer 2: y = A_hat @ (h @ W2) + b2 ----
    # num_classes < hidden -> transform first, then aggregate.
    hw = jnp.dot(h.astype(jnp.bfloat16), w2_ref[...],
                 preferred_element_type=jnp.float32)                 # [N, Cp] f32
    y = jnp.dot(a, hw.astype(jnp.bfloat16),
                preferred_element_type=jnp.float32) + b2_ref[...]    # [N, Cp] f32
    o_ref[...] = y.astype(o_ref.dtype)


def gcn_fused(a_hat, x, w1, b1, w2, b2):
    """Fused two-layer GCN forward: relu(A X W1 + b1) -> A (.) W2 + b2."""
    n, f_in = x.shape
    hidden = w1.shape[1]
    c = w2.shape[1]

    n_pad = _round_up(n, SUBLANE)   # sublane-aligned rows
    c_pad = _round_up(c, LANE)      # lane-dense output store (8 -> 128)

    # Zero-pad classifier weight / bias columns; sliced off after the call.
    w2p = jnp.zeros((hidden, c_pad), jnp.float32).at[:, :c].set(w2)
    b2p = jnp.zeros((1, c_pad), jnp.float32).at[:, :c].set(b2)

    # Zero-pad node dimension (padded rows/cols of A_hat are zero -> no
    # contribution to real rows; padded output rows are dropped).
    if n_pad != n:
        a_hat = jnp.zeros((n_pad, n_pad), jnp.float32).at[:n, :n].set(a_hat)
        x = jnp.zeros((n_pad, f_in), jnp.float32).at[:n, :].set(x)

    # bf16 MXU inputs (halves HBM/VMEM traffic); f32 accumulation in-kernel.
    a_bf = a_hat.astype(jnp.bfloat16)
    x_bf = x.astype(jnp.bfloat16)
    w1_bf = w1.astype(jnp.bfloat16)
    w2_bf = w2p.astype(jnp.bfloat16)

    flops = (2 * n_pad * n_pad * f_in          # A @ X
             + 2 * n_pad * f_in * hidden       # (A X) @ W1
             + 2 * n_pad * hidden * c_pad      # h @ W2
             + 2 * n_pad * n_pad * c_pad)      # A @ (h W2)
    bytes_accessed = (a_bf.size * 2 + x_bf.size * 2 + w1_bf.size * 2
                      + b1.size * 4 + w2_bf.size * 2 + b2p.size * 4
                      + n_pad * c_pad * 4)

    out = pl.pallas_call(
        gcn_fused_kernel,
        out_shape=jax.ShapeDtypeStruct((n_pad, c_pad), jnp.float32),
        grid_spec=pltpu.PrefetchScalarGridSpec(
            num_scalar_prefetch=0,
            grid=(1,),  # whole graph fits one VMEM tile at this size
            in_specs=[
                pl.BlockSpec((n_pad, n_pad), lambda i: (0, 0)),   # A_hat (bf16)
                pl.BlockSpec((n_pad, f_in), lambda i: (0, 0)),    # X (bf16)
                pl.BlockSpec((f_in, hidden), lambda i: (0, 0)),   # W1 (bf16)
                pl.BlockSpec((1, hidden), lambda i: (0, 0)),      # b1 (f32)
                pl.BlockSpec((hidden, c_pad), lambda i: (0, 0)),  # W2 padded (bf16)
                pl.BlockSpec((1, c_pad), lambda i: (0, 0)),       # b2 padded (f32)
            ],
            out_specs=pl.BlockSpec((n_pad, c_pad), lambda i: (0, 0)),
        ),
        compiler_params=pltpu.CompilerParams(
            dimension_semantics=("arbitrary",),
        ),
        cost_estimate=pl.CostEstimate(
            flops=flops, transcendentals=0, bytes_accessed=bytes_accessed),
    )(a_bf, x_bf, w1_bf, b1, w2_bf, b2p)

    return out[:n, :c]


# ------------------------------- glue (JAX) -------------------------------

def normalized_adjacency(edge_index, num_nodes):
    """Dense GCN normalization: D^-1/2 (A + I) D^-1/2.

    edge_index is [2, E] with row 0 = source, row 1 = target (PyG convention);
    message flows src -> dst, so A_hat[dst, src] carries the edge weight.
    """
    # TODO(synk): repeated edges are deduplicated here (set semantics); PyG's
    # scatter-add would count multiplicities on multigraphs.
    src, dst = edge_index[0], edge_index[1]
    a = jnp.zeros((num_nodes, num_nodes), jnp.float32)
    a = a.at[dst, src].set(1.0)
    # Add self loops only where absent (add_remaining_self_loops semantics).
    a = jnp.maximum(a, jnp.eye(num_nodes, dtype=jnp.float32))
    deg = a.sum(axis=1)
    d_inv_sqrt = jnp.where(deg > 0, 1.0 / jnp.sqrt(deg), 0.0)
    return d_inv_sqrt[:, None] * a * d_inv_sqrt[None, :]


def glorot(key, shape):
    fan_in, fan_out = shape
    limit = jnp.sqrt(6.0 / (fan_in + fan_out))
    return jax.random.uniform(key, shape, jnp.float32, -limit, limit)


def gcn_forward(x, edge_index, params, dropout_p=0.5, training=False):
    del dropout_p, training  # inference: dropout is the identity
    n = x.shape[0]
    a_hat = normalized_adjacency(edge_index, n)
    return gcn_fused(a_hat, x, params["w1"], params["b1"],
                     params["w2"], params["b2"])


# --------------------------------- main -----------------------------------

if __name__ == "__main__":
    key = jax.random.PRNGKey(0)
    k_x, k_e, k_w1, k_w2 = jax.random.split(key, 4)

    num_nodes = 128       # N
    num_features = 32     # dataset.num_features
    hidden = 64           # args.hidden
    num_classes = 8       # dataset.num_classes
    num_edges = 256

    # Deterministic synthetic graph (made symmetric, like a citation graph).
    x = jax.random.normal(k_x, (num_nodes, num_features), jnp.float32)
    e = jax.random.randint(k_e, (2, num_edges), 0, num_nodes, jnp.int32)
    edge_index = jnp.concatenate([e, e[::-1]], axis=1)  # symmetrize

    # Deterministic parameter init (GCNConv: glorot weight, zero bias).
    params = {
        "w1": glorot(k_w1, (num_features, hidden)),
        "b1": jnp.zeros((1, hidden), jnp.float32),
        "w2": glorot(k_w2, (hidden, num_classes)),
        "b2": jnp.zeros((1, num_classes), jnp.float32),
    }

    out = gcn_forward(x, edge_index, params)
    out = jax.block_until_ready(out)

    assert out.shape == (num_nodes, num_classes), out.shape
    assert jnp.all(jnp.isfinite(out))

    a_hat = normalized_adjacency(edge_index, num_nodes)

    # Tight check against a pure-JAX reference that mirrors the kernel's
    # bf16-input / f32-accumulate arithmetic.
    a_bf = a_hat.astype(jnp.bfloat16)
    ax = jnp.dot(a_bf, x.astype(jnp.bfloat16), preferred_element_type=jnp.float32)
    h_bf = jnp.maximum(
        jnp.dot(ax.astype(jnp.bfloat16), params["w1"].astype(jnp.bfloat16),
                preferred_element_type=jnp.float32) + params["b1"], 0.0)
    hw = jnp.dot(h_bf.astype(jnp.bfloat16), params["w2"].astype(jnp.bfloat16),
                 preferred_element_type=jnp.float32)
    ref_bf = jnp.dot(a_bf, hw.astype(jnp.bfloat16),
                     preferred_element_type=jnp.float32) + params["b2"]
    assert jnp.allclose(out, ref_bf, atol=2e-3, rtol=2e-3)

    # Looser sanity check against the full-precision math.
    h_f32 = jnp.maximum(a_hat @ (x @ params["w1"]) + params["b1"], 0.0)
    ref_f32 = a_hat @ (h_f32 @ params["w2"]) + params["b2"]
    assert jnp.allclose(out, ref_f32, atol=1e-1, rtol=1e-1)

    print("KERNEL_OK")
</pallas_src>

<mosaic_0001>
module attributes {stable_mosaic.version = 11 : i64} {
  func.func @gcn_fused_kernel(%arg0: i32, %arg1: memref<128x128xbf16, #tpu.memory_space<vmem>>, %arg2: memref<128x32xbf16, #tpu.memory_space<vmem>>, %arg3: memref<32x64xbf16, #tpu.memory_space<vmem>>, %arg4: memref<1x64xf32, #tpu.memory_space<vmem>>, %arg5: memref<64x128xbf16, #tpu.memory_space<vmem>>, %arg6: memref<1x128xf32, #tpu.memory_space<vmem>>, %arg7: memref<128x128xf32, #tpu.memory_space<vmem>>) attributes {dimension_semantics = [#tpu.dimension_semantics<arbitrary>], iteration_bounds = array<i64: 1>, scalar_prefetch = 0 : i64, scratch_operands = 0 : i64, tpu.core_type = #tpu.core_type<tc>, window_params = [{pipeline_mode = #tpu.pipeline_mode<synchronous>, transform_indices = @transform_0, window_bounds = array<i64: 128, 128>}, {pipeline_mode = #tpu.pipeline_mode<synchronous>, transform_indices = @transform_1, window_bounds = array<i64: 128, 32>}, {pipeline_mode = #tpu.pipeline_mode<synchronous>, transform_indices = @transform_2, window_bounds = array<i64: 32, 64>}, {pipeline_mode = #tpu.pipeline_mode<synchronous>, transform_indices = @transform_3, window_bounds = array<i64: 1, 64>}, {pipeline_mode = #tpu.pipeline_mode<synchronous>, transform_indices = @transform_4, window_bounds = array<i64: 64, 128>}, {pipeline_mode = #tpu.pipeline_mode<synchronous>, transform_indices = @transform_5, window_bounds = array<i64: 1, 128>}, {pipeline_mode = #tpu.pipeline_mode<synchronous>, transform_indices = @transform_6, window_bounds = array<i64: 128, 128>}]} {
    %c0 = arith.constant 0 : index
    %c0_0 = arith.constant 0 : index
    %0 = vector.load %arg1[%c0, %c0_0] : memref<128x128xbf16, #tpu.memory_space<vmem>>, vector<128x128xbf16>
    %c0_1 = arith.constant 0 : index
    %c0_2 = arith.constant 0 : index
    %1 = vector.load %arg2[%c0_1, %c0_2] : memref<128x32xbf16, #tpu.memory_space<vmem>>, vector<128x32xbf16>
    %cst = arith.constant dense<0.000000e+00> : vector<128x32xf32>
    %2 = tpu.matmul %0, %1, %cst {dimension_numbers = #tpu.dot_dimension_numbers<[1], [0], [0], [1], [0, 0, 1, 1], [], []>} : vector<128x128xbf16>, vector<128x32xbf16>, vector<128x32xf32> -> vector<128x32xf32>
    %3 = arith.truncf %2 : vector<128x32xf32> to vector<128x32xbf16>
    %c0_3 = arith.constant 0 : index
    %c0_4 = arith.constant 0 : index
    %4 = vector.load %arg3[%c0_3, %c0_4] : memref<32x64xbf16, #tpu.memory_space<vmem>>, vector<32x64xbf16>
    %cst_5 = arith.constant dense<0.000000e+00> : vector<128x64xf32>
    %5 = tpu.matmul %3, %4, %cst_5 {dimension_numbers = #tpu.dot_dimension_numbers<[1], [0], [0], [1], [0, 0, 1, 1], [], []>} : vector<128x32xbf16>, vector<32x64xbf16>, vector<128x64xf32> -> vector<128x64xf32>
    %c0_6 = arith.constant 0 : index
    %c0_7 = arith.constant 0 : index
    %6 = vector.load %arg4[%c0_6, %c0_7] : memref<1x64xf32, #tpu.memory_space<vmem>>, vector<1x64xf32>
    %7 = vector.broadcast %6 : vector<1x64xf32> to vector<128x64xf32>
    %8 = arith.addf %5, %7 : vector<128x64xf32>
    %cst_8 = arith.constant 0.000000e+00 : f32
    %9 = vector.broadcast %cst_8 : f32 to vector<128x64xf32>
    %10 = arith.maximumf %8, %9 : vector<128x64xf32>
    %11 = arith.truncf %10 : vector<128x64xf32> to vector<128x64xbf16>
    %c0_9 = arith.constant 0 : index
    %c0_10 = arith.constant 0 : index
    %12 = vector.load %arg5[%c0_9, %c0_10] : memref<64x128xbf16, #tpu.memory_space<vmem>>, vector<64x128xbf16>
    %cst_11 = arith.constant dense<0.000000e+00> : vector<128x128xf32>
    %13 = tpu.matmul %11, %12, %cst_11 {dimension_numbers = #tpu.dot_dimension_numbers<[1], [0], [0], [1], [0, 0, 1, 1], [], []>} : vector<128x64xbf16>, vector<64x128xbf16>, vector<128x128xf32> -> vector<128x128xf32>
    %14 = arith.truncf %13 : vector<128x128xf32> to vector<128x128xbf16>
    %cst_12 = arith.constant dense<0.000000e+00> : vector<128x128xf32>
    %15 = tpu.matmul %0, %14, %cst_12 {dimension_numbers = #tpu.dot_dimension_numbers<[1], [0], [0], [1], [0, 0, 1, 1], [], []>} : vector<128x128xbf16>, vector<128x128xbf16>, vector<128x128xf32> -> vector<128x128xf32>
    %c0_13 = arith.constant 0 : index
    %c0_14 = arith.constant 0 : index
    %16 = vector.load %arg6[%c0_13, %c0_14] : memref<1x128xf32, #tpu.memory_space<vmem>>, vector<1x128xf32>
    %17 = vector.broadcast %16 : vector<1x128xf32> to vector<128x128xf32>
    %18 = arith.addf %15, %17 : vector<128x128xf32>
    %c0_15 = arith.constant 0 : index
    %c0_16 = arith.constant 0 : index
    %19 = vector.load %arg7[%c0_15, %c0_16] : memref<128x128xf32, #tpu.memory_space<vmem>>, vector<128x128xf32>
    tpu.vector_store %arg7[%c0_15, %c0_16], %18 {strides = array<i32>} : memref<128x128xf32, #tpu.memory_space<vmem>>, vector<128x128xf32>,
    return
  }
  func.func @transform_0(%arg0: i32) -> (i32, i32) {
    %c0_i32 = arith.constant 0 : i32
    %c0_i32_0 = arith.constant 0 : i32
    %c0_i32_1 = arith.constant 0 : i32
    return %c0_i32, %c0_i32_0 : i32, i32
  }
  func.func @transform_1(%arg0: i32) -> (i32, i32) {
    %c0_i32 = arith.constant 0 : i32
    %c0_i32_0 = arith.constant 0 : i32
    %c0_i32_1 = arith.constant 0 : i32
    return %c0_i32, %c0_i32_0 : i32, i32
  }
  func.func @transform_2(%arg0: i32) -> (i32, i32) {
    %c0_i32 = arith.constant 0 : i32
    %c0_i32_0 = arith.constant 0 : i32
    %c0_i32_1 = arith.constant 0 : i32
    return %c0_i32, %c0_i32_0 : i32, i32
  }
  func.func @transform_3(%arg0: i32) -> (i32, i32) {
    %c0_i32 = arith.constant 0 : i32
    %c0_i32_0 = arith.constant 0 : i32
    %c0_i32_1 = arith.constant 0 : i32
    return %c0_i32, %c0_i32_0 : i32, i32
  }
  func.func @transform_4(%arg0: i32) -> (i32, i32) {
    %c0_i32 = arith.constant 0 : i32
    %c0_i32_0 = arith.constant 0 : i32
    %c0_i32_1 = arith.constant 0 : i32
    return %c0_i32, %c0_i32_0 : i32, i32
  }
  func.func @transform_5(%arg0: i32) -> (i32, i32) {
    %c0_i32 = arith.constant 0 : i32
    %c0_i32_0 = arith.constant 0 : i32
    %c0_i32_1 = arith.constant 0 : i32
    return %c0_i32, %c0_i32_0 : i32, i32
  }
  func.func @transform_6(%arg0: i32) -> (i32, i32) {
    %c0_i32 = arith.constant 0 : i32
    %c0_i32_0 = arith.constant 0 : i32
    %c0_i32_1 = arith.constant 0 : i32
    return %c0_i32, %c0_i32_0 : i32, i32
  }
}

</mosaic_0001>

<bundles_post_ra>
// kernel: tpu_custom_call.1
= control target key start
LH: loop header
LB: loop body
LE: loop exit
PB: predicated region body
PF: predicated region fallthrough
CT: control target
= control target key end

     0   :  { %11 = vsyncpa [#allocation3], 0  ;;  %s1203_s0 = inlined_call_operand.vmem [shape: bf16[128,128], index: 0, kind: input, shape index: {}]   ;;  %s1204_s1 = inlined_call_operand.vmem [shape: bf16[128,32], index: 1, kind: input, shape index: {}]   ;;  %s1205_s2 = inlined_call_operand.vmem [shape: bf16[32,64], index: 2, kind: input, shape index: {}]   ;;  %s1206_s3 = inlined_call_operand.vmem [shape: f32[1,64], index: 3, kind: input, shape index: {}]   ;;  %s1207_s4 = inlined_call_operand.hbm [shape: bf16[64,128], index: 4, kind: input, shape index: {}]   ;;  %s1208_s5 = inlined_call_operand.vmem [shape: f32[1,128], index: 5, kind: input, shape index: {}]   ;;  %s1209_s6 = inlined_call_operand.hbm [shape: f32[128,128], index: 6, kind: output, shape index: {}]  }
   0x1   :  { %12 = vsyncpa [#allocation4], 0  ;;  %s1034_s21 = smov [#allocation2]   ;;  %s986_s25 = scalar_lea.hbm %s1207_s4, 512 }
   0x2   :  { %s26_s22 = sshll.u32 %s1034_s21, 4  ;;  %p987_p0 = scmp.ne.s32.totalorder %s1207_s4, %s986_s25  ;;  %s27_s22 = int_to_ptr.vmem [resolvable:$true] %s26_s22 }
   0x3   :  { %p990_p1 = scmp.lt.u32.totalorder %s986_s25, %s1207_s4 }
   0x5   :  { %p992_p2 = pnand %p990_p1, %p987_p0 }
   0x7   :  { %995 = shalt.err (!%p992_p2)
}
   0x8   :  { %s996_s30 = scalar_lea.vmem %s27_s22, 512  ;;  %p1001_p4 = scmp.lt.s32.totalorder %s27_s22, %s27_s22 }
   0x9   :  { %p997_p3 = scmp.ne.s32.totalorder %s27_s22, %s996_s30  ;;  %p1002_p5 = scmp.lt.s32.totalorder %s996_s30, %s996_s30 }
   0xb   :  { %p1003_p6 = por %p1002_p5, %p1001_p4 }
   0xd   :  { %p1004_p7 = pnand %p1003_p6, %p997_p3 }
   0xf   :  { %1007 = shalt.err (!%p1004_p7)
}
  0x10   :  { %s1035_s7 = smov 64   ;;  %s1036_s8 = smov 4  }
  0x11   :  { %32 = dma.hbm_to_vmem [thread:$0]  %s1207_s4, 512, %s27_s22, [#allocation3], %s1035_s7, %s1035_s7, %s1036_s8  }
  0x12   :  { %1030 = dma.done.wait [#allocation3], 512  }
  0x13   :  { %1031 = vsyncadd [#allocation3], 4294966784  ;;  %v964_v0 = vld [vmem:[%s1204_s1] sm:$0xff]   ;;  %v965_v1 = vld [vmem:[%s1204_s1 + $0x8] sm:$0xff]   ;;  %vm295_vm0 = vcmask 261120   ;;  %vm473_vm1 = vcmask 523264  }
  0x14   :  { %834 = vmatprep.subr.bf16.mxu0 %v964_v0  ;;  %v966_v2 = vld [vmem:[%s1204_s1 + $0x10] sm:$0xff]   ;;  %v967_v3 = vld [vmem:[%s1204_s1 + $0x18] sm:$0xff]   ;;  %v972_v4 = vld [vmem:[%s1203_s0] sm:$0xff]  }
  0x15   :  { %835 = vmatpush3.bf16.msra.mxu0 %v964_v0  ;;  %850 = vmatprep.mubr.bf16.mxu0 %v972_v4  ;;  %v968_v5 = vld [vmem:[%s1204_s1 + $0x20] sm:$0xff]   ;;  %v969_v6 = vld [vmem:[%s1204_s1 + $0x28] sm:$0xff]   ;;  %v970_v8 = vld [vmem:[%s1204_s1 + $0x30] sm:$0xff]  }
  0x16   :  { %836 = vmatprep.subr.bf16.mxu0 %v965_v1  ;;  %v980_v7 = vld [vmem:[%s1205_s2] sm:$0xff]   ;;  %v971_v9 = vld [vmem:[%s1204_s1 + $0x38] sm:$0xff]   ;;  %v1120_v10 = vld [vmem:[%s1203_s0 + $0x8] sm:$0xff]  }
  0x17   :  { %866 = vmatprep.subr.bf16.mxu1 %v980_v7  ;;  %v1125_v11 = vld [vmem:[%s1203_s0 + $0x10] sm:$0xff]   ;;  %v1132_v12 = vld [vmem:[%s1203_s0 + $0x18] sm:$0xff]   ;;  %v1137_v13 = vld [vmem:[%s1203_s0 + $0x20] sm:$0xff]  }
  0x18   :  { %867 = vmatpush3.bf16.msra.mxu1 %v980_v7  ;;  %v1144_v14 = vld [vmem:[%s1203_s0 + $0x28] sm:$0xff]   ;;  %v1149_v15 = vld [vmem:[%s1203_s0 + $0x30] sm:$0xff]   ;;  %v1156_v16 = vld [vmem:[%s1203_s0 + $0x38] sm:$0xff]  }
  0x19   :  { %837 = vmatpush3.bf16.msra.mxu0 %v965_v1  ;;  %v981_v17 = vld [vmem:[%s1205_s2 + $0x8] sm:$0xff]   ;;  %v982_v18 = vld [vmem:[#allocation2] sm:$0xff]   ;;  %v984_v28 = vld [vmem:[#allocation2 + $0x10] sm:$0xff]  }
  0x1a   :  { %838 = vmatprep.subr.bf16.mxu0 %v966_v2  ;;  %868 = vmatprep.subr.bf16.mxu1 %v981_v17  ;;  %v983_v25 = vld [vmem:[#allocation2 + $0x8] sm:$0xff]   ;;  %v985_v45 = vld [vmem:[#allocation2 + $0x18] sm:$0xff]   ;;  %v756_v46 = vld [vmem:[%s1206_s3] ss:$0 sm:$0xff] }
  0x1c   :  { %869 = vmatpush3.bf16.msra.mxu1 %v981_v17 }
  0x1d   :  { %839 = vmatpush3.bf16.msra.mxu0 %v966_v2  ;;  %886 = vmatprep.subr.bf16.mxu1 %v982_v18 }
  0x1e   :  { %840 = vmatprep.subr.bf16.mxu0 %v967_v3 }
  0x21   :  { %841 = vmatpush3.bf16.msra.mxu0 %v967_v3 }
  0x22   :  { %842 = vmatprep.subr.bf16.mxu0 %v968_v5 }
  0x25   :  { %843 = vmatpush3.bf16.msra.mxu0 %v968_v5 }
  0x26   :  { %844 = vmatprep.subr.bf16.mxu0 %v969_v6 }
  0x29   :  { %845 = vmatpush3.bf16.msra.mxu0 %v969_v6 }
  0x2a   :  { %846 = vmatprep.subr.bf16.mxu0 %v970_v8 }
  0x2d   :  { %847 = vmatpush3.bf16.msra.mxu0 %v970_v8 }
  0x2e   :  { %848 = vmatprep.subr.bf16.mxu0 %v971_v9 }
  0x31   :  { %849 = vmatpush3.bf16.msra.mxu0 %v971_v9 }
  0x34   :  { %851 = vmatmul.mubr.bf16.vlgmr.msra.gmra.mrb[0].mxu0 %v1120_v10 }
  0x35   :  { %854 = vmatprep.mubr.bf16.mxu0 %v1125_v11 }
  0x3c   :  { %855 = vmatmul.mubr.bf16.gmra.mrb[4].mxu0 %v1132_v12 }
  0x3d   :  { %858 = vmatprep.mubr.bf16.mxu0 %v1137_v13 }
  0x44   :  { %859 = vmatmul.mubr.bf16.gmra.mrb[8].mxu0 %v1144_v14 }
  0x45   :  { %862 = vmatprep.mubr.bf16.mxu0 %v1149_v15 }
  0x4c   :  { %863 = vmatmul.mubr.bf16.gmra.mrb[12].mxu0 %v1156_v16 }
  0x4d   :  { %926 = vmatprep.mubr.bf16.mxu0 %v972_v4 }
 0x107   :  { %v852_v19 = vpop.f32.mrb[0].mxu0 }
 0x108   :  { %v201_v20 = vpop.f32.mrb[1].mxu0 }
 0x109   :  { %v853_v21 = vpop.f32.mrb[2].mxu0 }
 0x10a   :  { %v265_v22 = vpack.c.bf16 %v853_v21, %v852_v19  ;;  %v204_v23 = vpop.f32.mrb[3].mxu0 }
 0x10b   :  { %v264_v24 = vpack.c.bf16 %v204_v23, %v201_v20 }
 0x10d   :  { %870 = vmatprep.mubr.msk.bf16.mxu1 %vm295_vm0, %v264_v24 }
 0x10e   :  { %871 = vmatmul.mubr.msk.bf16.vlgmr.msra.gmra.mrb[0].mxu1 %vm295_vm0, %v265_v22 }
 0x10f   :  { %v856_v26 = vpop.f32.mrb[4].mxu0  ;;  %887 = vmatpush3.bf16.msra.mxu1 %v982_v18 }
 0x110   :  { %v217_v27 = vpop.f32.mrb[5].mxu0  ;;  %888 = vmatprep.subr.bf16.mxu1 %v983_v25 }
 0x111   :  { %v857_v29 = vpop.f32.mrb[6].mxu0 }
 0x112   :  { %v267_v30 = vpack.c.bf16 %v857_v29, %v856_v26  ;;  %v220_v31 = vpop.f32.mrb[7].mxu0 }
 0x113   :  { %v266_v32 = vpack.c.bf16 %v220_v31, %v217_v27  ;;  %889 = vmatpush3.bf16.msra.mxu1 %v983_v25 }
 0x114   :  { %890 = vmatprep.subr.bf16.mxu1 %v984_v28 }
 0x115   :  { %874 = vmatprep.mubr.msk.bf16.mxu1 %vm295_vm0, %v266_v32 }
 0x116   :  { %875 = vmatmul.mubr.msk.bf16.gmra.mrb[4].mxu1 %vm295_vm0, %v267_v30 }
 0x117   :  { %v860_v33 = vpop.f32.mrb[8].mxu0  ;;  %891 = vmatpush3.bf16.msra.mxu1 %v984_v28 }
 0x118   :  { %v233_v34 = vpop.f32.mrb[9].mxu0  ;;  %892 = vmatprep.subr.bf16.mxu1 %v985_v45 }
 0x119   :  { %v861_v35 = vpop.f32.mrb[10].mxu0 }
 0x11a   :  { %v269_v36 = vpack.c.bf16 %v861_v35, %v860_v33  ;;  %v236_v37 = vpop.f32.mrb[11].mxu0 }
 0x11b   :  { %v268_v38 = vpack.c.bf16 %v236_v37, %v233_v34  ;;  %893 = vmatpush3.bf16.msra.mxu1 %v985_v45 }
 0x11d   :  { %878 = vmatprep.mubr.msk.bf16.mxu1 %vm295_vm0, %v268_v38 }
 0x11e   :  { %879 = vmatmul.mubr.msk.bf16.gmra.mrb[8].mxu1 %vm295_vm0, %v269_v36 }
 0x11f   :  { %v864_v39 = vpop.f32.mrb[12].mxu0 }
 0x120   :  { %v249_v40 = vpop.f32.mrb[13].mxu0 }
 0x121   :  { %v865_v41 = vpop.f32.mrb[14].mxu0 }
 0x122   :  { %v271_v42 = vpack.c.bf16 %v865_v41, %v864_v39  ;;  %v252_v43 = vpop.f32.mrb[15].mxu0 }
 0x123   :  { %v270_v44 = vpack.c.bf16 %v252_v43, %v249_v40 }
 0x125   :  { %882 = vmatprep.mubr.msk.bf16.mxu1 %vm295_vm0, %v270_v44 }
 0x126   :  { %883 = vmatmul.mubr.msk.bf16.gmra.mrb[12].mxu1 %vm295_vm0, %v271_v42 }
 0x1e1   :  { %v872_v47 = vpop.f32.mrb[0].mxu1 }
 0x1e2   :  { %v363_v48 = vadd.f32 %v872_v47, %v756_v46  ;;  %v354_v49 = vpop.f32.mrb[1].mxu1 }
 0x1e3   :  { %v355_v50 = vadd.f32 %v756_v46, %v354_v49  ;;  %v873_v51 = vpop.f32.mrb[2].mxu1 }
 0x1e4   :  { %v366_v52 = vadd.f32 %v873_v51, %v756_v46  ;;  %v357_v53 = vpop.f32.mrb[3].mxu1  ;;  %v419_v55 = vmax.f32 %v363_v48, 0.0 }
 0x1e5   :  { %v358_v54 = vadd.f32 %v756_v46, %v357_v53  ;;  %v417_v57 = vmax.f32 %v355_v50, 0.0 }
 0x1e6   :  { %v420_v56 = vmax.f32 %v366_v52, 0.0 }
 0x1e7   :  { %v418_v58 = vmax.f32 %v358_v54, 0.0 }
 0x1e8   :  { %v434_v59 = vpack.c.bf16 %v420_v56, %v419_v55 }
 0x1e9   :  { %v433_v60 = vpack.c.bf16 %v418_v58, %v417_v57  ;;  %v876_v61 = vpop.f32.mrb[4].mxu1 }
 0x1ea   :  { %v379_v62 = vadd.f32 %v876_v61, %v756_v46  ;;  %v370_v63 = vpop.f32.mrb[5].mxu1 }
 0x1eb   :  { %v371_v0 = vadd.f32 %v756_v46, %v370_v63  ;;  %v877_v1 = vpop.f32.mrb[6].mxu1  ;;  %894 = vmatprep.mubr.msk.bf16.mxu1 %vm473_vm1, %v433_v60 }
 0x1ec   :  { %v382_v2 = vadd.f32 %v877_v1, %v756_v46  ;;  %v373_v3 = vpop.f32.mrb[7].mxu1  ;;  %895 = vmatmul.mubr.msk.bf16.vlgmr.msra.gmra.mrb[16].mxu1 %vm473_vm1, %v434_v59  ;;  %v423_v5 = vmax.f32 %v379_v62, 0.0 }
 0x1ed   :  { %v374_v4 = vadd.f32 %v756_v46, %v373_v3  ;;  %v421_v7 = vmax.f32 %v371_v0, 0.0 }
 0x1ee   :  { %v424_v6 = vmax.f32 %v382_v2, 0.0 }
 0x1ef   :  { %v422_v8 = vmax.f32 %v374_v4, 0.0 }
 0x1f0   :  { %v436_v9 = vpack.c.bf16 %v424_v6, %v423_v5  ;;  %v779_v5 = vld [vmem:[%s1208_s5] ss:$0 sm:$0xff]  ;;  %s1037_s5 = smov [#allocation5]  }
 0x1f1   :  { %v435_v17 = vpack.c.bf16 %v422_v8, %v421_v7  ;;  %v880_v18 = vpop.f32.mrb[8].mxu1  ;;  %s728_s21 = sshll.u32 %s1037_s5, 4  ;;  %s729_s21 = int_to_ptr.vmem [resolvable:$true] %s728_s21 }
 0x1f2   :  { %v395_v19 = vadd.f32 %v880_v18, %v756_v46  ;;  %v386_v20 = vpop.f32.mrb[9].mxu1  ;;  %s1008_s22 = scalar_lea.vmem %s729_s21, 2048  ;;  %p1013_p9 = scmp.lt.s32.totalorder %s729_s21, %s729_s21 }
 0x1f3   :  { %v387_v21 = vadd.f32 %v756_v46, %v386_v20  ;;  %v881_v22 = vpop.f32.mrb[10].mxu1  ;;  %898 = vmatprep.mubr.msk.bf16.mxu1 %vm473_vm1, %v435_v17  ;;  %p1009_p8 = scmp.ne.s32.totalorder %s729_s21, %s1008_s22  ;;  %p1014_p10 = scmp.lt.s32.totalorder %s1008_s22, %s1008_s22 }
 0x1f4   :  { %v398_v23 = vadd.f32 %v881_v22, %v756_v46  ;;  %v389_v24 = vpop.f32.mrb[11].mxu1  ;;  %899 = vmatmul.mubr.msk.bf16.gmra.mrb[20].mxu1 %vm473_vm1, %v436_v9  ;;  %v427_v26 = vmax.f32 %v395_v19, 0.0 }
 0x1f5   :  { %v390_v25 = vadd.f32 %v756_v46, %v389_v24  ;;  %v425_v28 = vmax.f32 %v387_v21, 0.0  ;;  %p1015_p11 = por %p1014_p10, %p1013_p9 }
 0x1f6   :  { %v428_v27 = vmax.f32 %v398_v23, 0.0 }
 0x1f7   :  { %v426_v29 = vmax.f32 %v390_v25, 0.0  ;;  %p1016_p12 = pnand %p1015_p11, %p1009_p8 }
 0x1f8   :  { %v438_v30 = vpack.c.bf16 %v428_v27, %v427_v26 }
 0x1f9   :  { %v437_v31 = vpack.c.bf16 %v426_v29, %v425_v28  ;;  %v884_v32 = vpop.f32.mrb[12].mxu1 }
 0x1fa   :  { %v411_v33 = vadd.f32 %v884_v32, %v756_v46  ;;  %v402_v34 = vpop.f32.mrb[13].mxu1 }
 0x1fb   :  { %v403_v35 = vadd.f32 %v756_v46, %v402_v34  ;;  %v885_v36 = vpop.f32.mrb[14].mxu1  ;;  %902 = vmatprep.mubr.msk.bf16.mxu1 %vm473_vm1, %v437_v31 }
 0x1fc   :  { %v414_v37 = vadd.f32 %v885_v36, %v756_v46  ;;  %v405_v38 = vpop.f32.mrb[15].mxu1  ;;  %903 = vmatmul.mubr.msk.bf16.gmra.mrb[24].mxu1 %vm473_vm1, %v438_v30  ;;  %v431_v40 = vmax.f32 %v411_v33, 0.0 }
 0x1fd   :  { %v406_v39 = vadd.f32 %v756_v46, %v405_v38  ;;  %v429_v42 = vmax.f32 %v403_v35, 0.0 }
 0x1fe   :  { %v432_v41 = vmax.f32 %v414_v37, 0.0 }
 0x1ff   :  { %v430_v43 = vmax.f32 %v406_v39, 0.0 }
 0x200   :  { %v440_v44 = vpack.c.bf16 %v432_v41, %v431_v40 }
 0x201   :  { %v439_v45 = vpack.c.bf16 %v430_v43, %v429_v42 }
 0x203   :  { %906 = vmatprep.mubr.msk.bf16.mxu1 %vm473_vm1, %v439_v45 }
 0x204   :  { %907 = vmatmul.mubr.msk.bf16.gmra.mrb[28].mxu1 %vm473_vm1, %v440_v44 }
 0x205   :  { %938 = vmatprep.mubr.bf16.mxu1 %v1149_v15 }
 0x2bf   :  { %v896_v47 = vpop.f32.mrb[16].mxu1 }
 0x2c0   :  { %v532_v48 = vpop.f32.mrb[17].mxu1 }
 0x2c1   :  { %v897_v49 = vpop.f32.mrb[18].mxu1 }
 0x2c2   :  { %v596_v50 = vpack.c.bf16 %v897_v49, %v896_v47  ;;  %v535_v51 = vpop.f32.mrb[19].mxu1 }
 0x2c3   :  { %v595_v52 = vpack.c.bf16 %v535_v51, %v532_v48 }
 0x2c5   :  { %910 = vmatprep.subr.bf16.mxu0 %v595_v52  ;;  %942 = vmatprep.subr.bf16.mxu1 %v595_v52 }
 0x2c6   :  { %911 = vmatpush3.bf16.msra.mxu0 %v595_v52  ;;  %950 = vmatpush3.bf16.msra.mxu1 %v595_v52 }
 0x2c7   :  { %v900_v46 = vpop.f32.mrb[20].mxu1  ;;  %912 = vmatprep.subr.bf16.mxu0 %v596_v50  ;;  %943 = vmatprep.subr.bf16.mxu1 %v596_v50 }
 0x2c8   :  { %v548_v53 = vpop.f32.mrb[21].mxu1 }
 0x2c9   :  { %v901_v54 = vpop.f32.mrb[22].mxu1 }
 0x2ca   :  { %v598_v55 = vpack.c.bf16 %v901_v54, %v900_v46  ;;  %v551_v56 = vpop.f32.mrb[23].mxu1  ;;  %913 = vmatpush3.bf16.msra.mxu0 %v596_v50  ;;  %951 = vmatpush3.bf16.msra.mxu1 %v596_v50 }
 0x2cb   :  { %v597_v15 = vpack.c.bf16 %v551_v56, %v548_v53 }
 0x2cd   :  { %914 = vmatprep.subr.bf16.mxu0 %v597_v15  ;;  %944 = vmatprep.subr.bf16.mxu1 %v597_v15 }
 0x2ce   :  { %915 = vmatpush3.bf16.msra.mxu0 %v597_v15  ;;  %952 = vmatpush3.bf16.msra.mxu1 %v597_v15 }
 0x2cf   :  { %v904_v57 = vpop.f32.mrb[24].mxu1  ;;  %916 = vmatprep.subr.bf16.mxu0 %v598_v55  ;;  %945 = vmatprep.subr.bf16.mxu1 %v598_v55 }
 0x2d0   :  { %v564_v58 = vpop.f32.mrb[25].mxu1 }
 0x2d1   :  { %v905_v59 = vpop.f32.mrb[26].mxu1 }
 0x2d2   :  { %v600_v60 = vpack.c.bf16 %v905_v59, %v904_v57  ;;  %v567_v61 = vpop.f32.mrb[27].mxu1  ;;  %917 = vmatpush3.bf16.msra.mxu0 %v598_v55  ;;  %953 = vmatpush3.bf16.msra.mxu1 %v598_v55 }
 0x2d3   :  { %v599_v62 = vpack.c.bf16 %v567_v61, %v564_v58 }
 0x2d5   :  { %918 = vmatprep.subr.bf16.mxu0 %v599_v62  ;;  %946 = vmatprep.subr.bf16.mxu1 %v599_v62 }
 0x2d6   :  { %919 = vmatpush3.bf16.msra.mxu0 %v599_v62  ;;  %954 = vmatpush3.bf16.msra.mxu1 %v599_v62 }
 0x2d7   :  { %v908_v63 = vpop.f32.mrb[28].mxu1  ;;  %920 = vmatprep.subr.bf16.mxu0 %v600_v60  ;;  %947 = vmatprep.subr.bf16.mxu1 %v600_v60 }
 0x2d8   :  { %v580_v0 = vpop.f32.mrb[29].mxu1 }
 0x2d9   :  { %v909_v1 = vpop.f32.mrb[30].mxu1 }
 0x2da   :  { %v602_v2 = vpack.c.bf16 %v909_v1, %v908_v63  ;;  %v583_v3 = vpop.f32.mrb[31].mxu1  ;;  %921 = vmatpush3.bf16.msra.mxu0 %v600_v60  ;;  %955 = vmatpush3.bf16.msra.mxu1 %v600_v60 }
 0x2db   :  { %v601_v4 = vpack.c.bf16 %v583_v3, %v580_v0 }
 0x2dd   :  { %922 = vmatprep.subr.bf16.mxu0 %v601_v4  ;;  %948 = vmatprep.subr.bf16.mxu1 %v601_v4 }
 0x2de   :  { %923 = vmatpush3.bf16.msra.mxu0 %v601_v4  ;;  %956 = vmatpush3.bf16.msra.mxu1 %v601_v4 }
 0x2df   :  { %924 = vmatprep.subr.bf16.mxu0 %v602_v2  ;;  %949 = vmatprep.subr.bf16.mxu1 %v602_v2 }
 0x2e2   :  { %925 = vmatpush3.bf16.msra.mxu0 %v602_v2  ;;  %957 = vmatpush3.bf16.msra.mxu1 %v602_v2 }
 0x2e5   :  { %927 = vmatmul.mubr.bf16.vlgmr.msra.gmra.mrb[16].mxu0 %v1120_v10  ;;  %939 = vmatmul.mubr.bf16.vlgmr.msra.gmra.mrb[32].mxu1 %v1156_v16 }
 0x2e6   :  { %930 = vmatprep.mubr.bf16.mxu0 %v1125_v11 }
 0x2ed   :  { %931 = vmatmul.mubr.bf16.gmra.mrb[20].mxu0 %v1132_v12 }
 0x2ee   :  { %934 = vmatprep.mubr.bf16.mxu0 %v1137_v13 }
 0x2f5   :  { %935 = vmatmul.mubr.bf16.gmra.mrb[24].mxu0 %v1144_v14 }
 0x3b8   :  { %v928_v6 = vpop.f32.mrb[16].mxu0  ;;  %v940_v7 = vpop.f32.mrb[32].mxu1 }
 0x3b9   :  { %v653_v8 = vadd.f32 %v928_v6, %v779_v5  ;;  %v644_v9 = vpop.f32.mrb[17].mxu0  ;;  %v701_v17 = vadd.f32 %v940_v7, %v779_v5  ;;  %v692_v10 = vpop.f32.mrb[33].mxu1 }
 0x3ba   :  { %v645_v18 = vadd.f32 %v779_v5, %v644_v9  ;;  %v929_v16 = vpop.f32.mrb[18].mxu0  ;;  %v693_v19 = vadd.f32 %v779_v5, %v692_v10  ;;  %v941_v11 = vpop.f32.mrb[34].mxu1 }
 0x3bb   :  { %709 = vst [vmem:[#allocation5 + $0x10] sm:$0xff] %v653_v8  ;;  %v656_v12 = vadd.f32 %v929_v16, %v779_v5  ;;  %v647_v20 = vpop.f32.mrb[19].mxu0  ;;  %721 = vst [vmem:[#allocation5 + $0x70] sm:$0xff] %v701_v17  ;;  %v704_v13 = vadd.f32 %v941_v11, %v779_v5  ;;  %v695_v14 = vpop.f32.mrb[35].mxu1 }
 0x3bc   :  { %707 = vst [vmem:[#allocation5] sm:$0xff] %v645_v18  ;;  %v648_v21 = vadd.f32 %v779_v5, %v647_v20  ;;  %719 = vst [vmem:[#allocation5 + $0x60] sm:$0xff] %v693_v19  ;;  %v696_v22 = vadd.f32 %v779_v5, %v695_v14 }
 0x3bd   :  { %710 = vst [vmem:[#allocation5 + $0x18] sm:$0xff] %v656_v12  ;;  %722 = vst [vmem:[#allocation5 + $0x78] sm:$0xff] %v704_v13 }
 0x3be   :  { %708 = vst [vmem:[#allocation5 + $0x8] sm:$0xff] %v648_v21  ;;  %720 = vst [vmem:[#allocation5 + $0x68] sm:$0xff] %v696_v22 }
 0x3c0   :  { %v932_v23 = vpop.f32.mrb[20].mxu0 }
 0x3c1   :  { %v669_v24 = vadd.f32 %v932_v23, %v779_v5  ;;  %v660_v25 = vpop.f32.mrb[21].mxu0 }
 0x3c2   :  { %v661_v26 = vadd.f32 %v779_v5, %v660_v25  ;;  %v933_v27 = vpop.f32.mrb[22].mxu0 }
 0x3c3   :  { %713 = vst [vmem:[#allocation5 + $0x30] sm:$0xff] %v669_v24  ;;  %v672_v28 = vadd.f32 %v933_v27, %v779_v5  ;;  %v663_v29 = vpop.f32.mrb[23].mxu0 }
 0x3c4   :  { %711 = vst [vmem:[#allocation5 + $0x20] sm:$0xff] %v661_v26  ;;  %v664_v30 = vadd.f32 %v779_v5, %v663_v29 }
 0x3c5   :  { %714 = vst [vmem:[#allocation5 + $0x38] sm:$0xff] %v672_v28 }
 0x3c6   :  { %712 = vst [vmem:[#allocation5 + $0x28] sm:$0xff] %v664_v30 }
 0x3c8   :  { %v936_v31 = vpop.f32.mrb[24].mxu0 }
 0x3c9   :  { %v685_v32 = vadd.f32 %v936_v31, %v779_v5  ;;  %v676_v33 = vpop.f32.mrb[25].mxu0 }
 0x3ca   :  { %v677_v34 = vadd.f32 %v779_v5, %v676_v33  ;;  %v937_v35 = vpop.f32.mrb[26].mxu0 }
 0x3cb   :  { %717 = vst [vmem:[#allocation5 + $0x50] sm:$0xff] %v685_v32  ;;  %v688_v36 = vadd.f32 %v937_v35, %v779_v5  ;;  %v679_v37 = vpop.f32.mrb[27].mxu0 }
 0x3cc   :  { %715 = vst [vmem:[#allocation5 + $0x40] sm:$0xff] %v677_v34  ;;  %v680_v38 = vadd.f32 %v779_v5, %v679_v37 }
 0x3cd   :  { %718 = vst [vmem:[#allocation5 + $0x58] sm:$0xff] %v688_v36 }
 0x3ce   :  { %716 = vst [vmem:[#allocation5 + $0x48] sm:$0xff] %v680_v38 }
 0x3cf   :  { %1019 = shalt.err (!%p1016_p12)
}
 0x3d0   :  { %s1020_s25 = scalar_lea.hbm %s1209_s6, 2048 }
 0x3d1   :  { %p1021_p13 = scmp.ne.s32.totalorder %s1209_s6, %s1020_s25  ;;  %p1024_p0 = scmp.lt.u32.totalorder %s1020_s25, %s1209_s6 }
 0x3d3   :  { %p1026_p1 = pnand %p1024_p0, %p1021_p13 }
 0x3d5   :  { %1029 = shalt.err (!%p1026_p1)
}
 0x3d6   :  { %s1038_s30 = smov 128   ;;  %s1039_s7 = smov 8  }
 0x3d7   :  { %734 = dma.vmem_to_hbm [thread:$0]  %s729_s21, 2048, %s1209_s6, [#allocation4], %s1038_s30, %s1038_s30, %s1039_s7  }
 0x3d8   :  { %1032 = dma.done.wait [#allocation4], 2048  }
 0x3d9   :  { %1033 = vsyncadd [#allocation4], 4294965248 }
 0x3da   :  { %738 = vsyncpa [#allocation3], 1 }
 0x3db   :  { %739 = vsyncpa [#allocation4], 1 }

</bundles_post_ra>
